<compile_context>
chip_gen: v6e
topology: v6e:2x2x1
jax: 0.10.0
libtpu: 0.0.40
codegen_flags: <defaults>
</compile_context>

<pallas_src>
import functools

import jax
import jax.numpy as jnp
from jax.experimental import pallas as pl
from jax.experimental.pallas import tpu as pltpu

_LANE = 128     # vreg lane width
_SUBLANE = 8    # vreg sublane count (f32)


def _round_up(x: int, m: int) -> int:
    return (x + m - 1) // m * m


def _mlp_kernel(x_ref, w1_ref, b1_ref, w2_ref, b2_ref, o_ref):
    # First linear + ReLU  (MXU matmul, f32 accumulation; bias add / ReLU on VPU).
    h = jnp.dot(x_ref[...], w1_ref[...], preferred_element_type=jnp.float32)
    h = jnp.maximum(h + b1_ref[...], 0.0)

    # TODO(synk): training-mode Dropout(p=0.3) (stochastic mask + 1/(1-p) scale)
    # omitted; identity in eval/inference mode.

    # Second linear (lane-dense: N padded to 128) + sigmoid, all in f32.
    z = jnp.dot(h, w2_ref[...], preferred_element_type=jnp.float32)
    z = z + b2_ref[...]
    o_ref[...] = jax.nn.sigmoid(z).astype(o_ref.dtype)


@functools.partial(jax.jit, static_argnames=("block_b",))
def binary_classifier_forward(x, w1, b1, w2, b2, *, block_b: int = 512):
    """x: (B, in_f); w1: (in_f, hid); b1: (1, hid); w2: (hid, out); b2: (1, out)."""
    B, in_f = x.shape
    hid = w1.shape[1]
    out_f = w2.shape[1]

    b1 = b1.reshape(1, -1)
    b2 = b2.reshape(1, -1)

    # Lane-dense padding of all feature dims up to the 128-lane vreg width.
    in_p = _round_up(in_f, _LANE)
    hid_p = _round_up(hid, _LANE)
    out_p = _round_up(out_f, _LANE)

    # Batch tile: multiple of the 8-row sublane; <= block_b rows.  At 128-wide
    # f32, double-buffered x+out tiles plus the resident (padded) weights and
    # the h intermediate stay far under v7x's 64 MiB VMEM for block_b=512.
    B_pad = _round_up(max(B, _SUBLANE), _SUBLANE)
    tb = min(block_b, B_pad)
    B_pad = _round_up(B_pad, tb)

    f32 = jnp.float32
    xp = jnp.zeros((B_pad, in_p), f32).at[:B, :in_f].set(x.astype(f32))
    w1p = jnp.zeros((in_p, hid_p), f32).at[:in_f, :hid].set(w1.astype(f32))
    b1p = jnp.zeros((1, hid_p), f32).at[:, :hid].set(b1.astype(f32))
    w2p = jnp.zeros((hid_p, out_p), f32).at[:hid, :out_f].set(w2.astype(f32))
    b2p = jnp.zeros((1, out_p), f32).at[:, :out_f].set(b2.astype(f32))

    grid = (B_pad // tb,)

    out_padded = pl.pallas_call(
        _mlp_kernel,
        out_shape=jax.ShapeDtypeStruct((B_pad, out_p), f32),
        grid_spec=pltpu.PrefetchScalarGridSpec(
            num_scalar_prefetch=0,
            grid=grid,
            in_specs=[
                pl.BlockSpec((tb, in_p), lambda i: (i, 0)),     # x: streamed per tile
                pl.BlockSpec((in_p, hid_p), lambda i: (0, 0)),  # W1: VMEM-resident
                pl.BlockSpec((1, hid_p), lambda i: (0, 0)),     # b1: VMEM-resident
                pl.BlockSpec((hid_p, out_p), lambda i: (0, 0)), # W2: VMEM-resident
                pl.BlockSpec((1, out_p), lambda i: (0, 0)),     # b2: VMEM-resident
            ],
            out_specs=pl.BlockSpec((tb, out_p), lambda i: (i, 0)),
        ),
        compiler_params=pltpu.CompilerParams(
            dimension_semantics=("parallel",),   # megacore sharding on v7x
            vmem_limit_bytes=64 << 20,
        ),
    )(xp, w1p, b1p, w2p, b2p)

    # Slice away batch / lane padding outside the kernel (nearly free in XLA).
    return out_padded[:B, :out_f]


if __name__ == "__main__":
    # Small shapes consistent with the module: Linear(in, hid) -> Linear(hid, out)
    batch = 8
    in_features = 32
    hidden_features = 32
    out_features = 1

    key = jax.random.PRNGKey(0)
    kx, k1, kb1, k2, kb2 = jax.random.split(key, 5)

    x = jax.random.normal(kx, (batch, in_features), dtype=jnp.float32)

    # Deterministic parameter init (PyTorch Linear weight is (out, in); stored
    # here pre-transposed as (in, out) for the kernel's x @ W convention).
    bound1 = 1.0 / jnp.sqrt(in_features)
    w1 = jax.random.uniform(k1, (in_features, hidden_features),
                            minval=-bound1, maxval=bound1, dtype=jnp.float32)
    b1 = jax.random.uniform(kb1, (1, hidden_features),
                            minval=-bound1, maxval=bound1, dtype=jnp.float32)

    bound2 = 1.0 / jnp.sqrt(hidden_features)
    w2 = jax.random.uniform(k2, (hidden_features, out_features),
                            minval=-bound2, maxval=bound2, dtype=jnp.float32)
    b2 = jax.random.uniform(kb2, (1, out_features),
                            minval=-bound2, maxval=bound2, dtype=jnp.float32)

    out = binary_classifier_forward(x, w1, b1, w2, b2)
    jax.block_until_ready(out)

    # Cross-check against a pure-JAX reference.
    ref = jax.nn.sigmoid(jnp.maximum(x @ w1 + b1, 0.0) @ w2 + b2)
    assert out.shape == ref.shape, f"shape mismatch {out.shape} vs {ref.shape}"
    assert jnp.allclose(out, ref, atol=1e-5), "mismatch vs reference"

    print("KERNEL_OK")
</pallas_src>

<mosaic_0001>
module attributes {stable_mosaic.version = 11 : i64} {
  func.func @_mlp_kernel(%arg0: i32, %arg1: memref<8x128xf32, #tpu.memory_space<vmem>>, %arg2: memref<128x128xf32, #tpu.memory_space<vmem>>, %arg3: memref<1x128xf32, #tpu.memory_space<vmem>>, %arg4: memref<128x128xf32, #tpu.memory_space<vmem>>, %arg5: memref<1x128xf32, #tpu.memory_space<vmem>>, %arg6: memref<8x128xf32, #tpu.memory_space<vmem>>) attributes {dimension_semantics = [#tpu.dimension_semantics<parallel>], iteration_bounds = array<i64: 1>, scalar_prefetch = 0 : i64, scratch_operands = 0 : i64, tpu.core_type = #tpu.core_type<tc>, window_params = [{transform_indices = @transform_0, window_bounds = array<i64: 8, 128>}, {pipeline_mode = #tpu.pipeline_mode<synchronous>, transform_indices = @transform_1, window_bounds = array<i64: 128, 128>}, {pipeline_mode = #tpu.pipeline_mode<synchronous>, transform_indices = @transform_2, window_bounds = array<i64: 1, 128>}, {pipeline_mode = #tpu.pipeline_mode<synchronous>, transform_indices = @transform_3, window_bounds = array<i64: 128, 128>}, {pipeline_mode = #tpu.pipeline_mode<synchronous>, transform_indices = @transform_4, window_bounds = array<i64: 1, 128>}, {transform_indices = @transform_5, window_bounds = array<i64: 8, 128>}]} {
    %c0 = arith.constant 0 : index
    %c0_0 = arith.constant 0 : index
    %0 = vector.load %arg1[%c0, %c0_0] : memref<8x128xf32, #tpu.memory_space<vmem>>, vector<8x128xf32>
    %c0_1 = arith.constant 0 : index
    %c0_2 = arith.constant 0 : index
    %1 = vector.load %arg2[%c0_1, %c0_2] : memref<128x128xf32, #tpu.memory_space<vmem>>, vector<128x128xf32>
    %cst = arith.constant dense<0.000000e+00> : vector<8x128xf32>
    %2 = tpu.matmul %0, %1, %cst {dimension_numbers = #tpu.dot_dimension_numbers<[1], [0], [0], [1], [0, 0, 1, 1], [], []>} : vector<8x128xf32>, vector<128x128xf32>, vector<8x128xf32> -> vector<8x128xf32>
    %c0_3 = arith.constant 0 : index
    %c0_4 = arith.constant 0 : index
    %3 = vector.load %arg3[%c0_3, %c0_4] : memref<1x128xf32, #tpu.memory_space<vmem>>, vector<1x128xf32>
    %4 = vector.broadcast %3 : vector<1x128xf32> to vector<8x128xf32>
    %5 = arith.addf %2, %4 : vector<8x128xf32>
    %cst_5 = arith.constant 0.000000e+00 : f32
    %6 = vector.broadcast %cst_5 : f32 to vector<8x128xf32>
    %7 = arith.maximumf %5, %6 : vector<8x128xf32>
    %c0_6 = arith.constant 0 : index
    %c0_7 = arith.constant 0 : index
    %8 = vector.load %arg4[%c0_6, %c0_7] : memref<128x128xf32, #tpu.memory_space<vmem>>, vector<128x128xf32>
    %cst_8 = arith.constant dense<0.000000e+00> : vector<8x128xf32>
    %9 = tpu.matmul %7, %8, %cst_8 {dimension_numbers = #tpu.dot_dimension_numbers<[1], [0], [0], [1], [0, 0, 1, 1], [], []>} : vector<8x128xf32>, vector<128x128xf32>, vector<8x128xf32> -> vector<8x128xf32>
    %c0_9 = arith.constant 0 : index
    %c0_10 = arith.constant 0 : index
    %10 = vector.load %arg5[%c0_9, %c0_10] : memref<1x128xf32, #tpu.memory_space<vmem>>, vector<1x128xf32>
    %11 = vector.broadcast %10 : vector<1x128xf32> to vector<8x128xf32>
    %12 = arith.addf %9, %11 : vector<8x128xf32>
    %13 = arith.negf %12 : vector<8x128xf32>
    %14 = math.exp %13 : vector<8x128xf32>
    %cst_11 = arith.constant 1.000000e+00 : f32
    %15 = vector.broadcast %cst_11 : f32 to vector<8x128xf32>
    %16 = arith.addf %15, %14 : vector<8x128xf32>
    %17 = arith.divf %15, %16 : vector<8x128xf32>
    %c0_12 = arith.constant 0 : index
    %c0_13 = arith.constant 0 : index
    %18 = vector.load %arg6[%c0_12, %c0_13] : memref<8x128xf32, #tpu.memory_space<vmem>>, vector<8x128xf32>
    tpu.vector_store %arg6[%c0_12, %c0_13], %17 {strides = array<i32>} : memref<8x128xf32, #tpu.memory_space<vmem>>, vector<8x128xf32>,
    return
  }
  func.func @transform_0(%arg0: i32) -> (i32, i32) {
    %c0_i32 = arith.constant 0 : i32
    %c0_i32_0 = arith.constant 0 : i32
    return %arg0, %c0_i32 : i32, i32
  }
  func.func @transform_1(%arg0: i32) -> (i32, i32) {
    %c0_i32 = arith.constant 0 : i32
    %c0_i32_0 = arith.constant 0 : i32
    %c0_i32_1 = arith.constant 0 : i32
    return %c0_i32, %c0_i32_0 : i32, i32
  }
  func.func @transform_2(%arg0: i32) -> (i32, i32) {
    %c0_i32 = arith.constant 0 : i32
    %c0_i32_0 = arith.constant 0 : i32
    %c0_i32_1 = arith.constant 0 : i32
    return %c0_i32, %c0_i32_0 : i32, i32
  }
  func.func @transform_3(%arg0: i32) -> (i32, i32) {
    %c0_i32 = arith.constant 0 : i32
    %c0_i32_0 = arith.constant 0 : i32
    %c0_i32_1 = arith.constant 0 : i32
    return %c0_i32, %c0_i32_0 : i32, i32
  }
  func.func @transform_4(%arg0: i32) -> (i32, i32) {
    %c0_i32 = arith.constant 0 : i32
    %c0_i32_0 = arith.constant 0 : i32
    %c0_i32_1 = arith.constant 0 : i32
    return %c0_i32, %c0_i32_0 : i32, i32
  }
  func.func @transform_5(%arg0: i32) -> (i32, i32) {
    %c0_i32 = arith.constant 0 : i32
    %c0_i32_0 = arith.constant 0 : i32
    return %arg0, %c0_i32 : i32, i32
  }
}

</mosaic_0001>

<bundles_post_ra>
// kernel: binary_classifier_forward.1
= control target key start
LH: loop header
LB: loop body
LE: loop exit
PB: predicated region body
PF: predicated region fallthrough
CT: control target
= control target key end

     0   :  { %v332_v0 = vmov 0.0   ;;  %vm333_vm0 = vmmov 0   ;;  %s506_s1 = inlined_call_operand.vmem [shape: f32[128,128], index: 1, kind: input, shape index: {}]   ;;  %s507_s3 = inlined_call_operand.vmem [shape: f32[128,128], index: 3, kind: input, shape index: {}]   ;;  %s508_s0 = inlined_call_operand.vmem [shape: f32[8,128], index: 0, kind: input, shape index: {}]   ;;  %s509_s2 = inlined_call_operand.vmem [shape: f32[1,128], index: 2, kind: input, shape index: {}]   ;;  %s510_s4 = inlined_call_operand.vmem [shape: f32[1,128], index: 4, kind: input, shape index: {}]   ;;  %s511_s5 = inlined_call_operand.vmem [shape: f32[8,128], index: 5, kind: output, shape index: {}]  }
   0x1   :  { %256 = vmatprep.subr.mxu0 %v332_v0  ;;  %v36_v1 = vld [vmem:[%s506_s1 + $0x78] sm:$0xff]  ;;  %v35_v2 = vld [vmem:[%s506_s1 + $0x70] sm:$0xff]  ;;  %288 = vmatprep.mubr.msk.f32.mxu0 %vm333_vm0, %v332_v0  ;;  %v34_v3 = vld [vmem:[%s506_s1 + $0x68] sm:$0xff] }
   0x2   :  { %257 = vmatpush3.msra.mxu0 %v36_v1  ;;  %291 = vmatprep.subr.mxu1 %v332_v0  ;;  %v33_v4 = vld [vmem:[%s506_s1 + $0x60] sm:$0xff]  ;;  %v130_v5 = vld [vmem:[%s507_s3 + $0x78] sm:$0xff]  ;;  %v129_v7 = vld [vmem:[%s507_s3 + $0x70] sm:$0xff] }
   0x3   :  { %258 = vmatprep.subr.mxu0 %v332_v0  ;;  %323 = vmatprep.mubr.msk.f32.mxu1 %vm333_vm0, %v332_v0  ;;  %v32_v6 = vld [vmem:[%s506_s1 + $0x58] sm:$0xff]  ;;  %v128_v8 = vld [vmem:[%s507_s3 + $0x68] sm:$0xff]  ;;  %v31_v9 = vld [vmem:[%s506_s1 + $0x50] sm:$0xff] }
   0x4   :  { %259 = vmatpush3.msra.mxu0 %v35_v2  ;;  %292 = vmatpush3.msra.mxu1 %v130_v5  ;;  %v127_v10 = vld [vmem:[%s507_s3 + $0x60] sm:$0xff]  ;;  %v30_v11 = vld [vmem:[%s506_s1 + $0x48] sm:$0xff]  ;;  %v126_v12 = vld [vmem:[%s507_s3 + $0x58] sm:$0xff] }
   0x5   :  { %260 = vmatprep.subr.mxu0 %v332_v0  ;;  %293 = vmatprep.subr.mxu1 %v332_v0  ;;  %v29_v13 = vld [vmem:[%s506_s1 + $0x40] sm:$0xff]  ;;  %v125_v14 = vld [vmem:[%s507_s3 + $0x50] sm:$0xff]  ;;  %v28_v15 = vld [vmem:[%s506_s1 + $0x38] sm:$0xff] }
   0x6   :  { %261 = vmatpush3.msra.mxu0 %v34_v3  ;;  %294 = vmatpush3.msra.mxu1 %v129_v7  ;;  %v124_v16 = vld [vmem:[%s507_s3 + $0x48] sm:$0xff]  ;;  %v27_v17 = vld [vmem:[%s506_s1 + $0x30] sm:$0xff]  ;;  %v123_v18 = vld [vmem:[%s507_s3 + $0x40] sm:$0xff] }
   0x7   :  { %262 = vmatprep.subr.mxu0 %v332_v0  ;;  %295 = vmatprep.subr.mxu1 %v332_v0  ;;  %v26_v19 = vld [vmem:[%s506_s1 + $0x28] sm:$0xff]  ;;  %v122_v20 = vld [vmem:[%s507_s3 + $0x38] sm:$0xff]  ;;  %v25_v21 = vld [vmem:[%s506_s1 + $0x20] sm:$0xff] }
   0x8   :  { %263 = vmatpush3.msra.mxu0 %v33_v4  ;;  %296 = vmatpush3.msra.mxu1 %v128_v8  ;;  %v121_v22 = vld [vmem:[%s507_s3 + $0x30] sm:$0xff]  ;;  %v24_v23 = vld [vmem:[%s506_s1 + $0x18] sm:$0xff]  ;;  %v120_v24 = vld [vmem:[%s507_s3 + $0x28] sm:$0xff] }
   0x9   :  { %264 = vmatprep.subr.mxu0 %v332_v0  ;;  %297 = vmatprep.subr.mxu1 %v332_v0  ;;  %v23_v25 = vld [vmem:[%s506_s1 + $0x10] sm:$0xff]  ;;  %v119_v26 = vld [vmem:[%s507_s3 + $0x20] sm:$0xff]  ;;  %v22_v27 = vld [vmem:[%s506_s1 + $0x8] sm:$0xff] }
   0xa   :  { %265 = vmatpush3.msra.mxu0 %v32_v6  ;;  %298 = vmatpush3.msra.mxu1 %v127_v10  ;;  %v118_v28 = vld [vmem:[%s507_s3 + $0x18] sm:$0xff]  ;;  %v21_v29 = vld [vmem:[%s506_s1] sm:$0xff]  ;;  %v117_v31 = vld [vmem:[%s507_s3 + $0x10] sm:$0xff] }
   0xb   :  { %266 = vmatprep.subr.mxu0 %v332_v0  ;;  %299 = vmatprep.subr.mxu1 %v332_v0  ;;  %v20_v30 = vld [vmem:[%s508_s0] sm:$0xff]  ;;  %v116_v32 = vld [vmem:[%s507_s3 + $0x8] sm:$0xff] }
   0xc   :  { %267 = vmatpush3.msra.mxu0 %v31_v9  ;;  %300 = vmatpush3.msra.mxu1 %v126_v12  ;;  %v115_v33 = vld [vmem:[%s507_s3] sm:$0xff] }
   0xd   :  { %268 = vmatprep.subr.mxu0 %v332_v0  ;;  %301 = vmatprep.subr.mxu1 %v332_v0  ;;  %v219_v34 = vld [vmem:[%s509_s2] ss:$0 sm:$0xff] }
   0xe   :  { %269 = vmatpush3.msra.mxu0 %v30_v11  ;;  %302 = vmatpush3.msra.mxu1 %v125_v14  ;;  %v220_v39 = vld [vmem:[%s510_s4] ss:$0 sm:$0xff] }
   0xf   :  { %270 = vmatprep.subr.mxu0 %v332_v0  ;;  %303 = vmatprep.subr.mxu1 %v332_v0 }
  0x10   :  { %271 = vmatpush3.msra.mxu0 %v29_v13  ;;  %304 = vmatpush3.msra.mxu1 %v124_v16 }
  0x11   :  { %272 = vmatprep.subr.mxu0 %v332_v0  ;;  %305 = vmatprep.subr.mxu1 %v332_v0 }
  0x12   :  { %273 = vmatpush3.msra.mxu0 %v28_v15  ;;  %306 = vmatpush3.msra.mxu1 %v123_v18 }
  0x13   :  { %274 = vmatprep.subr.mxu0 %v332_v0  ;;  %307 = vmatprep.subr.mxu1 %v332_v0 }
  0x14   :  { %275 = vmatpush3.msra.mxu0 %v27_v17  ;;  %308 = vmatpush3.msra.mxu1 %v122_v20 }
  0x15   :  { %276 = vmatprep.subr.mxu0 %v332_v0  ;;  %309 = vmatprep.subr.mxu1 %v332_v0 }
  0x16   :  { %277 = vmatpush3.msra.mxu0 %v26_v19  ;;  %310 = vmatpush3.msra.mxu1 %v121_v22 }
  0x17   :  { %278 = vmatprep.subr.mxu0 %v332_v0  ;;  %311 = vmatprep.subr.mxu1 %v332_v0 }
  0x18   :  { %279 = vmatpush3.msra.mxu0 %v25_v21  ;;  %312 = vmatpush3.msra.mxu1 %v120_v24 }
  0x19   :  { %280 = vmatprep.subr.mxu0 %v332_v0  ;;  %313 = vmatprep.subr.mxu1 %v332_v0 }
  0x1a   :  { %281 = vmatpush3.msra.mxu0 %v24_v23  ;;  %314 = vmatpush3.msra.mxu1 %v119_v26 }
  0x1b   :  { %282 = vmatprep.subr.mxu0 %v332_v0  ;;  %315 = vmatprep.subr.mxu1 %v332_v0 }
  0x1c   :  { %283 = vmatpush3.msra.mxu0 %v23_v25  ;;  %316 = vmatpush3.msra.mxu1 %v118_v28 }
  0x1d   :  { %284 = vmatprep.subr.mxu0 %v332_v0  ;;  %317 = vmatprep.subr.mxu1 %v332_v0 }
  0x1e   :  { %285 = vmatpush3.msra.mxu0 %v22_v27  ;;  %318 = vmatpush3.msra.mxu1 %v117_v31 }
  0x1f   :  { %286 = vmatprep.subr.mxu0 %v332_v0  ;;  %319 = vmatprep.subr.mxu1 %v332_v0 }
  0x20   :  { %287 = vmatpush3.msra.mxu0 %v21_v29  ;;  %320 = vmatpush3.msra.mxu1 %v116_v32 }
  0x21   :  { %289 = vmatmul.mubr.f32.vlgmr.msra.gmra.mxu0 %v20_v30  ;;  %321 = vmatprep.subr.mxu1 %v332_v0 }
  0x22   :  { %322 = vmatpush3.msra.mxu1 %v115_v33 }
  0xe1   :  { %v110_v35 = vpop.f32.mrf.mxu0 }
  0xe2   :  { %v111_v36 = vadd.f32 %v219_v34, %v110_v35 }
  0xe3   :  { %v290_v37 = vpop.f32.mrf.mxu0 }
  0xe4   :  { %v114_v38 = vmax.f32 %v111_v36, 0.0 }
  0xe6   :  { %324 = vmatmul.mubr.f32.vlgmr.msra.gmra.mxu1 %v114_v38 }
 0x1a6   :  { %v204_v40 = vpop.f32.mrf.mxu1 }
 0x1a7   :  { %v205_v41 = vadd.f32 %v220_v39, %v204_v40 }
 0x1a8   :  { %v325_v42 = vpop.f32.mrf.mxu1 }
 0x1a9   :  { %v221_v43 = vmul.f32 -1.442695, %v205_v41 }
 0x1ab   :  { %328 = vpow2.f32 %v221_v43 }
 0x1b8   :  { %v329_v44 = vpop.eup %328 }
 0x1b9   :  { %v211_v45 = vadd.f32 1.0, %v329_v44 }
 0x1bb   :  { %330 = vrcp.f32 %v211_v45 }
 0x1c8   :  { %v331_v46 = vpop.eup %330 }
 0x1c9   :  { %214 = vst [vmem:[%s511_s5] sm:$0xff] %v331_v46 }

</bundles_post_ra>
